<compile_context>
chip_gen: v6e
topology: v6e:2x2x1
jax: 0.10.0
libtpu: 0.0.40
codegen_flags: <defaults>
</compile_context>

<pallas_src>
import functools

import jax
import jax.numpy as jnp
from jax.experimental import pallas as pl
from jax.experimental.pallas import tpu as pltpu

NEG_SLOPE = 0.01  # torch.nn.LeakyReLU default negative_slope


# ----------------------------------------------------------------------------
# Hardware capability probe (best effort; safe defaults if probing fails).
# ----------------------------------------------------------------------------
def _tpu_caps():
    kind = ""
    try:
        kind = jax.devices()[0].device_kind.lower()
    except Exception:
        pass
    # Physical VMEM per TensorCore: 64 MiB on v7x, 128 MiB on v5e/v6e.
    vmem_bytes = (64 << 20) if (not kind or "v7" in kind) else (128 << 20)
    try:
        info = pltpu.get_tpu_info()
        vmem_bytes = int(getattr(info, "vmem_capacity_bytes", 0)) or vmem_bytes
    except Exception:
        pass
    # MXU tile width: 128 up through v5 generations, 256 on v6e/v7x.
    mxu_width = 128 if any(t in kind for t in ("v2", "v3", "v4", "v5")) else 256
    # TensorCores sharing the grid via "parallel" semantics.
    num_cores = 2 if any(t in kind for t in ("v4", "v5p", "v7")) else 1
    return vmem_bytes, mxu_width, num_cores


def _sublane(dtype):
    return {4: 8, 2: 16, 1: 32}.get(jnp.dtype(dtype).itemsize, 8)


# ----------------------------------------------------------------------------
# Kernel: fused MLP over one row tile.
# ----------------------------------------------------------------------------
def _mlp_kernel(x_ref, *refs, apply_act):
    """refs = (w0, b0, w1, b1, ..., wL, bL, out_ref); apply_act is static."""
    out_ref = refs[-1]
    params = refs[:-1]
    n_linear = len(params) // 2

    h = x_ref[...]
    for i in range(n_linear):
        w = params[2 * i][...]
        b = params[2 * i + 1][...].astype(jnp.float32)      # (1, out)
        # MXU matmul with f32 accumulation; LHS/RHS stay in their own dtype.
        h = jnp.dot(h, w, preferred_element_type=jnp.float32) + b
        if apply_act[i]:
            h = jnp.maximum(h, NEG_SLOPE * h)                # LeakyReLU(0.01)
        if i + 1 < n_linear:
            nxt = params[2 * (i + 1)].dtype
            if nxt != jnp.float32:
                # Keep bf16 (etc.) feeding the MXU at full rate on every layer.
                h = h.astype(nxt)
    out_ref[...] = h.astype(out_ref.dtype)


# ----------------------------------------------------------------------------
# Row-tiled driver.
# ----------------------------------------------------------------------------
def _choose_tile(M, *, sublane, row_bytes, param_bytes, vmem_budget, num_cores,
                 max_rows_cap=2048):
    """Pick the per-step row tile (second-to-last block dim)."""
    if M <= sublane:
        return M                                            # single full block
    avail = max(vmem_budget - param_bytes, 1 << 20)
    max_rows = min(max_rows_cap, max(sublane, avail // max(row_bytes, 1)))
    max_rows = max(sublane, (max_rows // sublane) * sublane)
    steps = max(pl.cdiv(M, max_rows), num_cores)
    if num_cores > 1 and steps % num_cores:
        steps += num_cores - (steps % num_cores)             # even TC split
    tile = ((pl.cdiv(M, steps) + sublane - 1) // sublane) * sublane
    tile = min(tile, max_rows)
    if tile >= M:
        return M
    return tile


def _mlp_over_rows(x2, weights, biases, apply_act, *, vmem_budget, num_cores):
    """Run the fused MLP over rows of x2 [M, K0] -> [M, out_width]."""
    M, K0 = x2.shape
    out_width = weights[-1].shape[1]

    params = []
    for w, b in zip(weights, biases):
        params.append(w)
        params.append(b.reshape(1, -1))
    param_bytes = sum(int(p.size) * p.dtype.itemsize for p in params)

    widest = max(max(w.shape[1] for w in weights), K0)
    itemsize = jnp.dtype(x2.dtype).itemsize
    # Double-buffered input/output tiles + f32 intermediate activation.
    row_bytes = 2 * (K0 + out_width) * itemsize + 4 * widest
    tile = _choose_tile(
        M, sublane=_sublane(x2.dtype), row_bytes=row_bytes,
        param_bytes=2 * param_bytes,          # assume params double-buffered
        vmem_budget=vmem_budget, num_cores=num_cores)
    grid = (pl.cdiv(M, tile),)                # partial edge block masked by Pallas

    kernel = functools.partial(_mlp_kernel, apply_act=apply_act)
    out_shape = jax.ShapeDtypeStruct((M, out_width), x2.dtype)
    compiler_params = pltpu.CompilerParams(
        dimension_semantics=("parallel",),
        vmem_limit_bytes=int(vmem_budget))

    def run(single_buffer_params):
        in_specs = [pl.BlockSpec((tile, K0), lambda i: (i, 0))]
        for p in params:
            if single_buffer_params:
                # Constant-index blocks: one resident copy halves param VMEM.
                spec = pl.BlockSpec(p.shape, lambda i: (0, 0),
                                    pipeline_mode=pl.Buffered(1))
            else:
                spec = pl.BlockSpec(p.shape, lambda i: (0, 0))
            in_specs.append(spec)
        return pl.pallas_call(
            kernel,
            out_shape=out_shape,
            grid_spec=pltpu.PrefetchScalarGridSpec(
                num_scalar_prefetch=0,
                grid=grid,
                in_specs=in_specs,
                out_specs=pl.BlockSpec((tile, out_width), lambda i: (i, 0)),
            ),
            compiler_params=compiler_params,
        )(x2, *params)

    try:
        return run(True)
    except Exception:
        # pipeline_mode=Buffered(1) not supported on this JAX build -> default.
        return run(False)


def _pad_last_layer_to_lanes(weights, biases):
    """Zero-pad the final layer's columns to a multiple of 128 (lane-dense store)."""
    out = weights[-1].shape[1]
    out_p = ((out + 127) // 128) * 128
    if out_p == out:
        return list(weights), list(biases), out
    w_last = jnp.pad(weights[-1], ((0, 0), (0, out_p - out)))
    b_last = jnp.pad(biases[-1], ((0, out_p - out),))
    return list(weights[:-1]) + [w_last], list(biases[:-1]) + [b_last], out


# ----------------------------------------------------------------------------
# Module wrapper (mirrors the torch IndependentTimeStepsMLP forward pass).
# ----------------------------------------------------------------------------
class IndependentTimeStepsMLP:
    def __init__(self, weights, biases, num_layers, *, flatten_time=True):
        assert len(weights) == len(biases)
        self.weights = [jnp.asarray(w) for w in weights]   # [in, out]
        self.biases = [jnp.asarray(b) for b in biases]     # [out]
        self.num_layers = num_layers
        self.flatten_time = flatten_time
        self.output_size = self.weights[-1].shape[1]
        # Hidden linears get LeakyReLU; the final output linear does not.
        self.apply_act = tuple(i < num_layers for i in range(len(self.weights)))
        self._vmem_bytes, self._mxu_width, self._num_cores = _tpu_caps()
        self._vmem_budget = min(self._vmem_bytes // 2, 64 << 20)
        self._fused_cache = {}   # T -> (weights, biases, logical_out_width)
        self._row_cache = None

    def _fused_params(self, T):
        if T not in self._fused_cache:
            eye = jnp.eye(T, dtype=self.weights[0].dtype)
            w_f = [jnp.kron(eye, w) for w in self.weights]   # block-diag [T*in, T*out]
            b_f = [jnp.tile(b, T) for b in self.biases]
            self._fused_cache[T] = _pad_last_layer_to_lanes(w_f, b_f)
        return self._fused_cache[T]

    def _row_params(self):
        if self._row_cache is None:
            self._row_cache = _pad_last_layer_to_lanes(self.weights, self.biases)
        return self._row_cache

    def _use_fused(self, T):
        widths = [self.weights[0].shape[0]] + [w.shape[1] for w in self.weights]
        if T * max(widths) > self._mxu_width:
            # Block-diagonal width would span several MXU tiles: most pushes
            # would multiply structural zeros -> take the row fallback.
            return False
        raw = sum(int(w.size) * w.dtype.itemsize for w in self.weights) \
            + sum(int(b.size) * b.dtype.itemsize for b in self.biases)
        return 2 * T * T * raw <= self._vmem_budget // 2

    def __call__(self, x):
        assert x.ndim == 3
        B, T, F = x.shape
        if self._use_fused(T):
            # Time-fused: one wide MLP over [B, T*F]; output is already the
            # flatten_time layout (lane-dense, T*output_size wide).
            w_f, b_f, logical = self._fused_params(T)
            out2 = _mlp_over_rows(x.reshape(B, T * F), w_f, b_f, self.apply_act,
                                  vmem_budget=self._vmem_budget,
                                  num_cores=self._num_cores)
            if out2.shape[1] != logical:
                out2 = out2[:, :logical]
            if self.flatten_time:
                return out2
            return out2.reshape(B, T, self.output_size)
        # Row fallback: every (b, t) row independently through the original MLP.
        w_r, b_r, logical = self._row_params()
        out2 = _mlp_over_rows(x.reshape(B * T, F), w_r, b_r, self.apply_act,
                              vmem_budget=self._vmem_budget,
                              num_cores=self._num_cores)
        if out2.shape[1] != logical:
            out2 = out2[:, :logical]
        if self.flatten_time:
            return out2.reshape(B, T * logical)
        return out2.reshape(B, T, logical)


# ----------------------------------------------------------------------------
# Deterministic init + pure-JAX reference.
# ----------------------------------------------------------------------------
def _init_params(key, sizes):
    """Mimics torch.nn.Linear default init: U(-1/sqrt(fan_in), +1/sqrt(fan_in))."""
    weights, biases = [], []
    for n_in, n_out in zip(sizes[:-1], sizes[1:]):
        key, kw, kb = jax.random.split(key, 3)
        bound = 1.0 / jnp.sqrt(n_in)
        weights.append(jax.random.uniform(kw, (n_in, n_out), jnp.float32, -bound, bound))
        biases.append(jax.random.uniform(kb, (n_out,), jnp.float32, -bound, bound))
    return weights, biases


def _reference(x, weights, biases, num_layers, flatten_time=True):
    B, T, F = x.shape
    h = x.reshape(B * T, F)
    for i, (w, b) in enumerate(zip(weights, biases)):
        h = h @ w + b
        if i < num_layers:
            h = jnp.where(h > 0, h, NEG_SLOPE * h)
    if flatten_time:
        return h.reshape(B, T * h.shape[1])
    return h.reshape(B, T, h.shape[1])


if __name__ == "__main__":
    # IndependentTimeStepsMLP config.
    feature_size = 8
    num_layers = 2
    num_neurons = 32
    output_size = 16
    B, T = 2, 8

    key = jax.random.PRNGKey(0)
    key, kx = jax.random.split(key)
    x = jax.random.normal(kx, (B, T, feature_size), dtype=jnp.float32)

    sizes = [feature_size] + [num_neurons] * num_layers + [output_size]
    weights, biases = _init_params(key, sizes)

    # flatten_time=True (default path on this chip: fused or row fallback,
    # whichever the MXU-fit gate picks).
    mlp = IndependentTimeStepsMLP(weights, biases, num_layers, flatten_time=True)
    out = jax.block_until_ready(mlp(x))
    ref = _reference(x, weights, biases, num_layers, flatten_time=True)
    assert out.shape == (B, T * output_size), out.shape
    assert jnp.allclose(out, ref, atol=2e-5, rtol=2e-5), \
        float(jnp.max(jnp.abs(out - ref)))

    # flatten_time=False.
    mlp_nf = IndependentTimeStepsMLP(weights, biases, num_layers, flatten_time=False)
    out_nf = jax.block_until_ready(mlp_nf(x))
    ref_nf = _reference(x, weights, biases, num_layers, flatten_time=False)
    assert out_nf.shape == (B, T, output_size), out_nf.shape
    assert jnp.allclose(out_nf, ref_nf, atol=2e-5, rtol=2e-5), \
        float(jnp.max(jnp.abs(out_nf - ref_nf)))

    # Force the generic row-fallback path (lane-padded output) and check it too.
    mlp_fb = IndependentTimeStepsMLP(weights, biases, num_layers, flatten_time=True)
    mlp_fb._mxu_width = 1   # makes _use_fused() return False
    out_fb = jax.block_until_ready(mlp_fb(x))
    assert out_fb.shape == (B, T * output_size), out_fb.shape
    assert jnp.allclose(out_fb, ref, atol=2e-5, rtol=2e-5), \
        float(jnp.max(jnp.abs(out_fb - ref)))

    print("KERNEL_OK")
</pallas_src>

<mosaic_0001>
module attributes {stable_mosaic.version = 11 : i64} {
  func.func @_mlp_kernel(%arg0: i32, %arg1: memref<2x64xf32, #tpu.memory_space<vmem>>, %arg2: memref<64x256xf32, #tpu.memory_space<vmem>>, %arg3: memref<1x256xf32, #tpu.memory_space<vmem>>, %arg4: memref<256x256xf32, #tpu.memory_space<vmem>>, %arg5: memref<1x256xf32, #tpu.memory_space<vmem>>, %arg6: memref<256x128xf32, #tpu.memory_space<vmem>>, %arg7: memref<1x128xf32, #tpu.memory_space<vmem>>, %arg8: memref<2x128xf32, #tpu.memory_space<vmem>>) attributes {dimension_semantics = [#tpu.dimension_semantics<parallel>], iteration_bounds = array<i64: 1>, scalar_prefetch = 0 : i64, scratch_operands = 0 : i64, tpu.core_type = #tpu.core_type<tc>, window_params = [{transform_indices = @transform_0, window_bounds = array<i64: 2, 64>}, {pipeline_mode = #tpu.pipeline_mode<synchronous>, transform_indices = @transform_1, window_bounds = array<i64: 64, 256>}, {pipeline_mode = #tpu.pipeline_mode<synchronous>, transform_indices = @transform_2, window_bounds = array<i64: 1, 256>}, {pipeline_mode = #tpu.pipeline_mode<synchronous>, transform_indices = @transform_3, window_bounds = array<i64: 256, 256>}, {pipeline_mode = #tpu.pipeline_mode<synchronous>, transform_indices = @transform_4, window_bounds = array<i64: 1, 256>}, {pipeline_mode = #tpu.pipeline_mode<synchronous>, transform_indices = @transform_5, window_bounds = array<i64: 256, 128>}, {pipeline_mode = #tpu.pipeline_mode<synchronous>, transform_indices = @transform_6, window_bounds = array<i64: 1, 128>}, {transform_indices = @transform_7, window_bounds = array<i64: 2, 128>}]} {
    %c0 = arith.constant 0 : index
    %c0_0 = arith.constant 0 : index
    %0 = vector.load %arg1[%c0, %c0_0] : memref<2x64xf32, #tpu.memory_space<vmem>>, vector<2x64xf32>
    %c0_1 = arith.constant 0 : index
    %c0_2 = arith.constant 0 : index
    %1 = vector.load %arg2[%c0_1, %c0_2] : memref<64x256xf32, #tpu.memory_space<vmem>>, vector<64x256xf32>
    %c0_3 = arith.constant 0 : index
    %c0_4 = arith.constant 0 : index
    %2 = vector.load %arg3[%c0_3, %c0_4] : memref<1x256xf32, #tpu.memory_space<vmem>>, vector<1x256xf32>
    %cst = arith.constant dense<0.000000e+00> : vector<2x256xf32>
    %3 = tpu.matmul %0, %1, %cst {dimension_numbers = #tpu.dot_dimension_numbers<[1], [0], [0], [1], [0, 0, 1, 1], [], []>} : vector<2x64xf32>, vector<64x256xf32>, vector<2x256xf32> -> vector<2x256xf32>
    %4 = vector.broadcast %2 : vector<1x256xf32> to vector<2x256xf32>
    %5 = arith.addf %3, %4 : vector<2x256xf32>
    %cst_5 = arith.constant 0.00999999977 : f32
    %6 = vector.broadcast %cst_5 : f32 to vector<2x256xf32>
    %7 = arith.mulf %6, %5 : vector<2x256xf32>
    %8 = arith.maximumf %5, %7 : vector<2x256xf32>
    %c0_6 = arith.constant 0 : index
    %c0_7 = arith.constant 0 : index
    %9 = vector.load %arg4[%c0_6, %c0_7] : memref<256x256xf32, #tpu.memory_space<vmem>>, vector<256x256xf32>
    %c0_8 = arith.constant 0 : index
    %c0_9 = arith.constant 0 : index
    %10 = vector.load %arg5[%c0_8, %c0_9] : memref<1x256xf32, #tpu.memory_space<vmem>>, vector<1x256xf32>
    %cst_10 = arith.constant dense<0.000000e+00> : vector<2x256xf32>
    %11 = tpu.matmul %8, %9, %cst_10 {dimension_numbers = #tpu.dot_dimension_numbers<[1], [0], [0], [1], [0, 0, 1, 1], [], []>} : vector<2x256xf32>, vector<256x256xf32>, vector<2x256xf32> -> vector<2x256xf32>
    %12 = vector.broadcast %10 : vector<1x256xf32> to vector<2x256xf32>
    %13 = arith.addf %11, %12 : vector<2x256xf32>
    %cst_11 = arith.constant 0.00999999977 : f32
    %14 = vector.broadcast %cst_11 : f32 to vector<2x256xf32>
    %15 = arith.mulf %14, %13 : vector<2x256xf32>
    %16 = arith.maximumf %13, %15 : vector<2x256xf32>
    %c0_12 = arith.constant 0 : index
    %c0_13 = arith.constant 0 : index
    %17 = vector.load %arg6[%c0_12, %c0_13] : memref<256x128xf32, #tpu.memory_space<vmem>>, vector<256x128xf32>
    %c0_14 = arith.constant 0 : index
    %c0_15 = arith.constant 0 : index
    %18 = vector.load %arg7[%c0_14, %c0_15] : memref<1x128xf32, #tpu.memory_space<vmem>>, vector<1x128xf32>
    %cst_16 = arith.constant dense<0.000000e+00> : vector<2x128xf32>
    %19 = tpu.matmul %16, %17, %cst_16 {dimension_numbers = #tpu.dot_dimension_numbers<[1], [0], [0], [1], [0, 0, 1, 1], [], []>} : vector<2x256xf32>, vector<256x128xf32>, vector<2x128xf32> -> vector<2x128xf32>
    %20 = vector.broadcast %18 : vector<1x128xf32> to vector<2x128xf32>
    %21 = arith.addf %19, %20 : vector<2x128xf32>
    %c0_17 = arith.constant 0 : index
    %c0_18 = arith.constant 0 : index
    %22 = vector.load %arg8[%c0_17, %c0_18] : memref<2x128xf32, #tpu.memory_space<vmem>>, vector<2x128xf32>
    tpu.vector_store %arg8[%c0_17, %c0_18], %21 {strides = array<i32>} : memref<2x128xf32, #tpu.memory_space<vmem>>, vector<2x128xf32>,
    return
  }
  func.func @transform_0(%arg0: i32) -> (i32, i32) {
    %c0_i32 = arith.constant 0 : i32
    %c0_i32_0 = arith.constant 0 : i32
    return %arg0, %c0_i32 : i32, i32
  }
  func.func @transform_1(%arg0: i32) -> (i32, i32) {
    %c0_i32 = arith.constant 0 : i32
    %c0_i32_0 = arith.constant 0 : i32
    %c0_i32_1 = arith.constant 0 : i32
    return %c0_i32, %c0_i32_0 : i32, i32
  }
  func.func @transform_2(%arg0: i32) -> (i32, i32) {
    %c0_i32 = arith.constant 0 : i32
    %c0_i32_0 = arith.constant 0 : i32
    %c0_i32_1 = arith.constant 0 : i32
    return %c0_i32, %c0_i32_0 : i32, i32
  }
  func.func @transform_3(%arg0: i32) -> (i32, i32) {
    %c0_i32 = arith.constant 0 : i32
    %c0_i32_0 = arith.constant 0 : i32
    %c0_i32_1 = arith.constant 0 : i32
    return %c0_i32, %c0_i32_0 : i32, i32
  }
  func.func @transform_4(%arg0: i32) -> (i32, i32) {
    %c0_i32 = arith.constant 0 : i32
    %c0_i32_0 = arith.constant 0 : i32
    %c0_i32_1 = arith.constant 0 : i32
    return %c0_i32, %c0_i32_0 : i32, i32
  }
  func.func @transform_5(%arg0: i32) -> (i32, i32) {
    %c0_i32 = arith.constant 0 : i32
    %c0_i32_0 = arith.constant 0 : i32
    %c0_i32_1 = arith.constant 0 : i32
    return %c0_i32, %c0_i32_0 : i32, i32
  }
  func.func @transform_6(%arg0: i32) -> (i32, i32) {
    %c0_i32 = arith.constant 0 : i32
    %c0_i32_0 = arith.constant 0 : i32
    %c0_i32_1 = arith.constant 0 : i32
    return %c0_i32, %c0_i32_0 : i32, i32
  }
  func.func @transform_7(%arg0: i32) -> (i32, i32) {
    %c0_i32 = arith.constant 0 : i32
    %c0_i32_0 = arith.constant 0 : i32
    return %arg0, %c0_i32 : i32, i32
  }
}

module attributes {stable_mosaic.version = 11 : i64} {
  func.func @_mlp_kernel(%arg0: i32, %arg1: memref<2x64xf32, #tpu.memory_space<vmem>>, %arg2: memref<64x256xf32, #tpu.memory_space<vmem>>, %arg3: memref<1x256xf32, #tpu.memory_space<vmem>>, %arg4: memref<256x256xf32, #tpu.memory_space<vmem>>, %arg5: memref<1x256xf32, #tpu.memory_space<vmem>>, %arg6: memref<256x128xf32, #tpu.memory_space<vmem>>, %arg7: memref<1x128xf32, #tpu.memory_space<vmem>>, %arg8: memref<2x128xf32, #tpu.memory_space<vmem>>) attributes {dimension_semantics = [#tpu.dimension_semantics<parallel>], iteration_bounds = array<i64: 1>, scalar_prefetch = 0 : i64, scratch_operands = 0 : i64, tpu.core_type = #tpu.core_type<tc>, window_params = [{transform_indices = @transform_0, window_bounds = array<i64: 2, 64>}, {pipeline_mode = #tpu.pipeline_mode<synchronous>, transform_indices = @transform_1, window_bounds = array<i64: 64, 256>}, {pipeline_mode = #tpu.pipeline_mode<synchronous>, transform_indices = @transform_2, window_bounds = array<i64: 1, 256>}, {pipeline_mode = #tpu.pipeline_mode<synchronous>, transform_indices = @transform_3, window_bounds = array<i64: 256, 256>}, {pipeline_mode = #tpu.pipeline_mode<synchronous>, transform_indices = @transform_4, window_bounds = array<i64: 1, 256>}, {pipeline_mode = #tpu.pipeline_mode<synchronous>, transform_indices = @transform_5, window_bounds = array<i64: 256, 128>}, {pipeline_mode = #tpu.pipeline_mode<synchronous>, transform_indices = @transform_6, window_bounds = array<i64: 1, 128>}, {transform_indices = @transform_7, window_bounds = array<i64: 2, 128>}]} {
    %c0 = arith.constant 0 : index
    %c0_0 = arith.constant 0 : index
    %0 = vector.load %arg1[%c0, %c0_0] : memref<2x64xf32, #tpu.memory_space<vmem>>, vector<2x64xf32>
    %c0_1 = arith.constant 0 : index
    %c0_2 = arith.constant 0 : index
    %1 = vector.load %arg2[%c0_1, %c0_2] : memref<64x256xf32, #tpu.memory_space<vmem>>, vector<64x256xf32>
    %c0_3 = arith.constant 0 : index
    %c0_4 = arith.constant 0 : index
    %2 = vector.load %arg3[%c0_3, %c0_4] : memref<1x256xf32, #tpu.memory_space<vmem>>, vector<1x256xf32>
    %cst = arith.constant dense<0.000000e+00> : vector<2x256xf32>
    %3 = tpu.matmul %0, %1, %cst {dimension_numbers = #tpu.dot_dimension_numbers<[1], [0], [0], [1], [0, 0, 1, 1], [], []>} : vector<2x64xf32>, vector<64x256xf32>, vector<2x256xf32> -> vector<2x256xf32>
    %4 = vector.broadcast %2 : vector<1x256xf32> to vector<2x256xf32>
    %5 = arith.addf %3, %4 : vector<2x256xf32>
    %cst_5 = arith.constant 0.00999999977 : f32
    %6 = vector.broadcast %cst_5 : f32 to vector<2x256xf32>
    %7 = arith.mulf %6, %5 : vector<2x256xf32>
    %8 = arith.maximumf %5, %7 : vector<2x256xf32>
    %c0_6 = arith.constant 0 : index
    %c0_7 = arith.constant 0 : index
    %9 = vector.load %arg4[%c0_6, %c0_7] : memref<256x256xf32, #tpu.memory_space<vmem>>, vector<256x256xf32>
    %c0_8 = arith.constant 0 : index
    %c0_9 = arith.constant 0 : index
    %10 = vector.load %arg5[%c0_8, %c0_9] : memref<1x256xf32, #tpu.memory_space<vmem>>, vector<1x256xf32>
    %cst_10 = arith.constant dense<0.000000e+00> : vector<2x256xf32>
    %11 = tpu.matmul %8, %9, %cst_10 {dimension_numbers = #tpu.dot_dimension_numbers<[1], [0], [0], [1], [0, 0, 1, 1], [], []>} : vector<2x256xf32>, vector<256x256xf32>, vector<2x256xf32> -> vector<2x256xf32>
    %12 = vector.broadcast %10 : vector<1x256xf32> to vector<2x256xf32>
    %13 = arith.addf %11, %12 : vector<2x256xf32>
    %cst_11 = arith.constant 0.00999999977 : f32
    %14 = vector.broadcast %cst_11 : f32 to vector<2x256xf32>
    %15 = arith.mulf %14, %13 : vector<2x256xf32>
    %16 = arith.maximumf %13, %15 : vector<2x256xf32>
    %c0_12 = arith.constant 0 : index
    %c0_13 = arith.constant 0 : index
    %17 = vector.load %arg6[%c0_12, %c0_13] : memref<256x128xf32, #tpu.memory_space<vmem>>, vector<256x128xf32>
    %c0_14 = arith.constant 0 : index
    %c0_15 = arith.constant 0 : index
    %18 = vector.load %arg7[%c0_14, %c0_15] : memref<1x128xf32, #tpu.memory_space<vmem>>, vector<1x128xf32>
    %cst_16 = arith.constant dense<0.000000e+00> : vector<2x128xf32>
    %19 = tpu.matmul %16, %17, %cst_16 {dimension_numbers = #tpu.dot_dimension_numbers<[1], [0], [0], [1], [0, 0, 1, 1], [], []>} : vector<2x256xf32>, vector<256x128xf32>, vector<2x128xf32> -> vector<2x128xf32>
    %20 = vector.broadcast %18 : vector<1x128xf32> to vector<2x128xf32>
    %21 = arith.addf %19, %20 : vector<2x128xf32>
    %c0_17 = arith.constant 0 : index
    %c0_18 = arith.constant 0 : index
    %22 = vector.load %arg8[%c0_17, %c0_18] : memref<2x128xf32, #tpu.memory_space<vmem>>, vector<2x128xf32>
    tpu.vector_store %arg8[%c0_17, %c0_18], %21 {strides = array<i32>} : memref<2x128xf32, #tpu.memory_space<vmem>>, vector<2x128xf32>,
    return
  }
  func.func @transform_0(%arg0: i32) -> (i32, i32) {
    %c0_i32 = arith.constant 0 : i32
    %c0_i32_0 = arith.constant 0 : i32
    return %arg0, %c0_i32 : i32, i32
  }
  func.func @transform_1(%arg0: i32) -> (i32, i32) {
    %c0_i32 = arith.constant 0 : i32
    %c0_i32_0 = arith.constant 0 : i32
    %c0_i32_1 = arith.constant 0 : i32
    return %c0_i32, %c0_i32_0 : i32, i32
  }
  func.func @transform_2(%arg0: i32) -> (i32, i32) {
    %c0_i32 = arith.constant 0 : i32
    %c0_i32_0 = arith.constant 0 : i32
    %c0_i32_1 = arith.constant 0 : i32
    return %c0_i32, %c0_i32_0 : i32, i32
  }
  func.func @transform_3(%arg0: i32) -> (i32, i32) {
    %c0_i32 = arith.constant 0 : i32
    %c0_i32_0 = arith.constant 0 : i32
    %c0_i32_1 = arith.constant 0 : i32
    return %c0_i32, %c0_i32_0 : i32, i32
  }
  func.func @transform_4(%arg0: i32) -> (i32, i32) {
    %c0_i32 = arith.constant 0 : i32
    %c0_i32_0 = arith.constant 0 : i32
    %c0_i32_1 = arith.constant 0 : i32
    return %c0_i32, %c0_i32_0 : i32, i32
  }
  func.func @transform_5(%arg0: i32) -> (i32, i32) {
    %c0_i32 = arith.constant 0 : i32
    %c0_i32_0 = arith.constant 0 : i32
    %c0_i32_1 = arith.constant 0 : i32
    return %c0_i32, %c0_i32_0 : i32, i32
  }
  func.func @transform_6(%arg0: i32) -> (i32, i32) {
    %c0_i32 = arith.constant 0 : i32
    %c0_i32_0 = arith.constant 0 : i32
    %c0_i32_1 = arith.constant 0 : i32
    return %c0_i32, %c0_i32_0 : i32, i32
  }
  func.func @transform_7(%arg0: i32) -> (i32, i32) {
    %c0_i32 = arith.constant 0 : i32
    %c0_i32_0 = arith.constant 0 : i32
    return %arg0, %c0_i32 : i32, i32
  }
}

</mosaic_0001>

<bundles_post_ra>
// kernel: tpu_custom_call.1
= control target key start
LH: loop header
LB: loop body
LE: loop exit
PB: predicated region body
PF: predicated region fallthrough
CT: control target
= control target key end

     0   :  { %12 = vsyncpa [#allocation3], 0  ;;  %s695_s0 = inlined_call_operand.hbm [shape: f32[2,64], index: 0, kind: input, shape index: {}]   ;;  %s696_s1 = inlined_call_operand.hbm [shape: f32[64,256], index: 1, kind: input, shape index: {}]   ;;  %s697_s2 = inlined_call_operand.vmem [shape: f32[1,256], index: 2, kind: input, shape index: {}]   ;;  %s698_s3 = inlined_call_operand.hbm [shape: f32[256,256], index: 3, kind: input, shape index: {}]   ;;  %s699_s4 = inlined_call_operand.vmem [shape: f32[1,256], index: 4, kind: input, shape index: {}]   ;;  %s700_s5 = inlined_call_operand.hbm [shape: f32[256,128], index: 5, kind: input, shape index: {}]   ;;  %s701_s6 = inlined_call_operand.vmem [shape: f32[1,128], index: 6, kind: input, shape index: {}]   ;;  %s702_s7 = inlined_call_operand.hbm [shape: f32[2,128], index: 7, kind: output, shape index: {}]  }
   0x1   :  { %13 = vsyncpa [#allocation6], 0 }
   0x2   :  { %14 = vsyncpa [#allocation9], 0 }
   0x3   :  { %15 = vsyncpa [#allocation4], 0  ;;  %s621_s24 = smov [#allocation5]  }
   0x4   :  { %s31_s25 = sshll.u32 %s621_s24, 4  ;;  %s32_s25 = int_to_ptr.vmem [resolvable:$true] %s31_s25 }
   0x5   :  { %s521_s26 = scalar_lea.vmem %s32_s25, 2048  ;;  %p526_p1 = scmp.lt.s32.totalorder %s32_s25, %s32_s25 }
   0x6   :  { %p522_p0 = scmp.ne.s32.totalorder %s32_s25, %s521_s26  ;;  %p527_p2 = scmp.lt.s32.totalorder %s521_s26, %s521_s26 }
   0x8   :  { %p528_p3 = por %p527_p2, %p526_p1 }
   0xa   :  { %p529_p4 = pnand %p528_p3, %p522_p0 }
   0xc   :  { %532 = shalt.err (!%p529_p4)
}
   0xd   :  { %s622_s27 = smov 256   ;;  %s623_s28 = smov 16  }
   0xe   :  { %37 = dma.hbm_to_vmem [thread:$0]  %s696_s1, 2048, %s32_s25, [#allocation6], %s622_s27, %s622_s27, %s623_s28  }
   0xf   :  { %s624_s8 = smov [#allocation2]   ;;  %s625_s10 = smov [#allocation7]  }
  0x10   :  { %s22_s9 = sshll.u32 %s624_s8, 4  ;;  %s45_s11 = sshll.u32 %s625_s10, 4  ;;  %s23_s9 = int_to_ptr.vmem [resolvable:$true] %s22_s9  ;;  %s46_s11 = int_to_ptr.vmem [resolvable:$true] %s45_s11 }
  0x11   :  { %s541_s12 = scalar_lea.vmem %s23_s9, 32  ;;  %p546_p6 = scmp.lt.s32.totalorder %s23_s9, %s23_s9 }
  0x12   :  { %p542_p5 = scmp.ne.s32.totalorder %s23_s9, %s541_s12  ;;  %p547_p7 = scmp.lt.s32.totalorder %s541_s12, %s541_s12 }
  0x14   :  { %p548_p8 = por %p547_p7, %p546_p6 }
  0x16   :  { %p549_p9 = pnand %p548_p8, %p542_p5 }
  0x18   :  { %552 = shalt.err (!%p549_p9)
}
  0x19   :  { %25 = dma.hbm_to_vmem [thread:$0]  %s695_s0, 32, %s23_s9, [#allocation3]  }
  0x1a   :  { %s561_s15 = scalar_lea.vmem %s46_s11, 8192  ;;  %p566_p11 = scmp.lt.s32.totalorder %s46_s11, %s46_s11 }
  0x1b   :  { %p562_p10 = scmp.ne.s32.totalorder %s46_s11, %s561_s15  ;;  %p567_p12 = scmp.lt.s32.totalorder %s561_s15, %s561_s15 }
  0x1d   :  { %p568_p13 = por %p567_p12, %p566_p11 }
  0x1f   :  { %p569_p0 = pnand %p568_p13, %p562_p10 }
  0x21   :  { %572 = shalt.err (!%p569_p0)
}
  0x22   :  { %51 = dma.hbm_to_vmem [thread:$0]  %s698_s3, 8192, %s46_s11, [#allocation6], %s622_s27, %s622_s27, %s623_s28  }
  0x23   :  { %s626_s17 = smov [#allocation8]  }
  0x24   :  { %s59_s18 = sshll.u32 %s626_s17, 4  ;;  %s60_s18 = int_to_ptr.vmem [resolvable:$true] %s59_s18 }
  0x25   :  { %s581_s19 = scalar_lea.vmem %s60_s18, 4096  ;;  %p586_p2 = scmp.lt.s32.totalorder %s60_s18, %s60_s18 }
  0x26   :  { %p582_p1 = scmp.ne.s32.totalorder %s60_s18, %s581_s19  ;;  %p587_p3 = scmp.lt.s32.totalorder %s581_s19, %s581_s19 }
  0x28   :  { %p588_p4 = por %p587_p3, %p586_p2 }
  0x2a   :  { %p589_p5 = pnand %p588_p4, %p582_p1 }
  0x2c   :  { %592 = shalt.err (!%p589_p5)
}
  0x2d   :  { %s627_s0 = smov 128   ;;  %s628_s20 = smov 8  }
  0x2e   :  { %65 = dma.hbm_to_vmem [thread:$0]  %s700_s5, 4096, %s60_s18, [#allocation9], %s627_s0, %s627_s0, %s628_s20  }
  0x2f   :  { %613 = dma.done.wait [#allocation3], 32  }
  0x30   :  { %614 = vsyncadd [#allocation3], 4294967264 }
  0x31   :  { %615 = dma.done.wait [#allocation6], 10240  }
  0x32   :  { %616 = vsyncadd [#allocation6], 4294957056 }
  0x33   :  { %617 = dma.done.wait [#allocation9], 4096  }
  0x34   :  { %618 = vsyncadd [#allocation9], 4294963200  ;;  %v629_v0 = vmov 0.0   ;;  %v96_v1 = vld [vmem:[#allocation5 + $0x78] sm:$0xff]  ;;  %v95_v2 = vld [vmem:[#allocation5 + $0x70] sm:$0xff]  ;;  %vm109_vm0 = vcmask 523264  }
  0x35   :  { %177 = vmatprep.mubr.f32.mxu0 %v629_v0  ;;  %v94_v3 = vld [vmem:[#allocation5 + $0x68] sm:$0xff]  ;;  %129 = vmatprep.subr.mxu0 %v96_v1  ;;  %v93_v4 = vld [vmem:[#allocation5 + $0x60] sm:$0xff]  ;;  %v92_v5 = vld [vmem:[#allocation5 + $0x58] sm:$0xff]  ;;  %s630_s26 = smov [#allocation10]  }
  0x36   :  { %130 = vmatpush1.msra.mxu0 %v95_v2  ;;  %v91_v6 = vld [vmem:[#allocation5 + $0x50] sm:$0xff]  ;;  %v90_v7 = vld [vmem:[#allocation5 + $0x48] sm:$0xff]  ;;  %v89_v8 = vld [vmem:[#allocation5 + $0x40] sm:$0xff] }
  0x37   :  { %131 = vmatprep.subr.mxu0 %v94_v3  ;;  %v88_v9 = vld [vmem:[#allocation5 + $0x38] sm:$0xff]  ;;  %v218_v11 = vld [vmem:[#allocation7 + $0xf0] sm:$0xff]  ;;  %v217_v12 = vld [vmem:[#allocation7 + $0xe8] sm:$0xff] }
  0x38   :  { %132 = vmatpush1.msra.mxu0 %v93_v4  ;;  %v219_v10 = vld [vmem:[#allocation7 + $0xf8] sm:$0xff]  ;;  %v216_v13 = vld [vmem:[#allocation7 + $0xe0] sm:$0xff]  ;;  %v87_v14 = vld [vmem:[#allocation5 + $0x30] sm:$0xff] }
  0x39   :  { %133 = vmatprep.subr.mxu0 %v92_v5  ;;  %264 = vmatprep.subr.mxu1 %v219_v10  ;;  %v215_v15 = vld [vmem:[#allocation7 + $0xd8] sm:$0xff]  ;;  %v86_v16 = vld [vmem:[#allocation5 + $0x28] sm:$0xff]  ;;  %v214_v17 = vld [vmem:[#allocation7 + $0xd0] sm:$0xff] }
  0x3a   :  { %134 = vmatpush1.msra.mxu0 %v91_v6  ;;  %265 = vmatpush1.msra.mxu1 %v218_v11  ;;  %v85_v18 = vld [vmem:[#allocation5 + $0x20] sm:$0xff]  ;;  %v213_v19 = vld [vmem:[#allocation7 + $0xc8] sm:$0xff]  ;;  %v84_v20 = vld [vmem:[#allocation5 + $0x18] sm:$0xff] }
  0x3b   :  { %135 = vmatprep.subr.mxu0 %v90_v7  ;;  %266 = vmatprep.subr.mxu1 %v217_v12  ;;  %v212_v21 = vld [vmem:[#allocation7 + $0xc0] sm:$0xff]  ;;  %v83_v22 = vld [vmem:[#allocation5 + $0x10] sm:$0xff]  ;;  %v211_v23 = vld [vmem:[#allocation7 + $0xb8] sm:$0xff] }
  0x3c   :  { %136 = vmatpush1.msra.mxu0 %v89_v8  ;;  %267 = vmatpush1.msra.mxu1 %v216_v13  ;;  %v82_v24 = vld [vmem:[#allocation5 + $0x8] sm:$0xff]  ;;  %v210_v25 = vld [vmem:[#allocation7 + $0xb0] sm:$0xff]  ;;  %v81_v26 = vld [vmem:[#allocation5] sm:$0xff] }
  0x3d   :  { %137 = vmatprep.subr.mxu0 %v88_v9  ;;  %268 = vmatprep.subr.mxu1 %v215_v15  ;;  %v209_v27 = vld [vmem:[#allocation7 + $0xa8] sm:$0xff]  ;;  %v80_v28 = vld [vmem:[#allocation2] sm:$0x3]  ;;  %v208_v29 = vld [vmem:[#allocation7 + $0xa0] sm:$0xff] }
  0x3e   :  { %138 = vmatpush1.msra.mxu0 %v87_v14  ;;  %269 = vmatpush1.msra.mxu1 %v214_v17  ;;  %v207_v30 = vld [vmem:[#allocation7 + $0x98] sm:$0xff]  ;;  %v206_v31 = vld [vmem:[#allocation7 + $0x90] sm:$0xff]  ;;  %v205_v32 = vld [vmem:[#allocation7 + $0x88] sm:$0xff] }
  0x3f   :  { %139 = vmatprep.subr.mxu0 %v86_v16  ;;  %270 = vmatprep.subr.mxu1 %v213_v19  ;;  %v204_v33 = vld [vmem:[#allocation7 + $0x80] sm:$0xff]  ;;  %v203_v34 = vld [vmem:[#allocation7 + $0x78] sm:$0xff]  ;;  %v202_v35 = vld [vmem:[#allocation7 + $0x70] sm:$0xff] }
  0x40   :  { %140 = vmatpush1.msra.mxu0 %v85_v18  ;;  %271 = vmatpush1.msra.mxu1 %v212_v21  ;;  %v201_v36 = vld [vmem:[#allocation7 + $0x68] sm:$0xff]  ;;  %v200_v37 = vld [vmem:[#allocation7 + $0x60] sm:$0xff]  ;;  %v199_v38 = vld [vmem:[#allocation7 + $0x58] sm:$0xff] }
  0x41   :  { %141 = vmatprep.subr.mxu0 %v84_v20  ;;  %272 = vmatprep.subr.mxu1 %v211_v23  ;;  %v198_v39 = vld [vmem:[#allocation7 + $0x50] sm:$0xff]  ;;  %v197_v40 = vld [vmem:[#allocation7 + $0x48] sm:$0xff]  ;;  %v196_v41 = vld [vmem:[#allocation7 + $0x40] sm:$0xff] }
  0x42   :  { %142 = vmatpush1.msra.mxu0 %v83_v22  ;;  %273 = vmatpush1.msra.mxu1 %v210_v25  ;;  %v195_v42 = vld [vmem:[#allocation7 + $0x38] sm:$0xff]  ;;  %v194_v43 = vld [vmem:[#allocation7 + $0x30] sm:$0xff]  ;;  %v193_v44 = vld [vmem:[#allocation7 + $0x28] sm:$0xff] }
  0x43   :  { %143 = vmatprep.subr.mxu0 %v82_v24  ;;  %274 = vmatprep.subr.mxu1 %v209_v27  ;;  %v192_v45 = vld [vmem:[#allocation7 + $0x20] sm:$0xff]  ;;  %v191_v46 = vld [vmem:[#allocation7 + $0x18] sm:$0xff]  ;;  %v190_v47 = vld [vmem:[#allocation7 + $0x10] sm:$0xff] }
  0x44   :  { %144 = vmatpush1.msra.mxu0 %v81_v26  ;;  %275 = vmatpush1.msra.mxu1 %v208_v29  ;;  %v189_v48 = vld [vmem:[#allocation7 + $0x8] sm:$0xff]  ;;  %v188_v49 = vld [vmem:[#allocation7] sm:$0xff]  ;;  %v251_v50 = vld [vmem:[#allocation7 + $0x1f8] sm:$0xff] }
  0x45   :  { %466 = vmatmul.mubr.msk.f32.vlgmr.msra.gmra.mxu0 %vm109_vm0, %v80_v28  ;;  %276 = vmatprep.subr.mxu1 %v207_v30  ;;  %v250_v51 = vld [vmem:[#allocation7 + $0x1f0] sm:$0xff]  ;;  %v249_v52 = vld [vmem:[#allocation7 + $0x1e8] sm:$0xff]  ;;  %v248_v53 = vld [vmem:[#allocation7 + $0x1e0] sm:$0xff] }
  0x46   :  { %277 = vmatpush1.msra.mxu1 %v206_v31  ;;  %v247_v54 = vld [vmem:[#allocation7 + $0x1d8] sm:$0xff]  ;;  %v246_v55 = vld [vmem:[#allocation7 + $0x1d0] sm:$0xff]  ;;  %v245_v56 = vld [vmem:[#allocation7 + $0x1c8] sm:$0xff] }
  0x47   :  { %278 = vmatprep.subr.mxu1 %v205_v32  ;;  %v244_v57 = vld [vmem:[#allocation7 + $0x1c0] sm:$0xff]  ;;  %v243_v58 = vld [vmem:[#allocation7 + $0x1b8] sm:$0xff]  ;;  %v242_v59 = vld [vmem:[#allocation7 + $0x1b0] sm:$0xff] }
  0x48   :  { %279 = vmatpush1.msra.mxu1 %v204_v33  ;;  %v241_v60 = vld [vmem:[#allocation7 + $0x1a8] sm:$0xff]  ;;  %v240_v61 = vld [vmem:[#allocation7 + $0x1a0] sm:$0xff]  ;;  %v239_v62 = vld [vmem:[#allocation7 + $0x198] sm:$0xff] }
  0x49   :  { %280 = vmatprep.subr.mxu1 %v203_v34  ;;  %v238_v63 = vld [vmem:[#allocation7 + $0x190] sm:$0xff]  ;;  %v237_v0 = vld [vmem:[#allocation7 + $0x188] sm:$0xff]  ;;  %v236_v1 = vld [vmem:[#allocation7 + $0x180] sm:$0xff] }
  0x4a   :  { %281 = vmatpush1.msra.mxu1 %v202_v35  ;;  %v235_v2 = vld [vmem:[#allocation7 + $0x178] sm:$0xff]  ;;  %v234_v3 = vld [vmem:[#allocation7 + $0x170] sm:$0xff]  ;;  %v233_v4 = vld [vmem:[#allocation7 + $0x168] sm:$0xff] }
  0x4b   :  { %282 = vmatprep.subr.mxu1 %v201_v36  ;;  %v232_v5 = vld [vmem:[#allocation7 + $0x160] sm:$0xff]  ;;  %v231_v6 = vld [vmem:[#allocation7 + $0x158] sm:$0xff]  ;;  %v230_v7 = vld [vmem:[#allocation7 + $0x150] sm:$0xff] }
  0x4c   :  { %283 = vmatpush1.msra.mxu1 %v200_v37  ;;  %v229_v8 = vld [vmem:[#allocation7 + $0x148] sm:$0xff]  ;;  %v228_v9 = vld [vmem:[#allocation7 + $0x140] sm:$0xff]  ;;  %v227_v10 = vld [vmem:[#allocation7 + $0x138] sm:$0xff] }
  0x4d   :  { %284 = vmatprep.subr.mxu1 %v199_v38  ;;  %v226_v11 = vld [vmem:[#allocation7 + $0x130] sm:$0xff]  ;;  %v225_v12 = vld [vmem:[#allocation7 + $0x128] sm:$0xff]  ;;  %v224_v13 = vld [vmem:[#allocation7 + $0x120] sm:$0xff] }
  0x4e   :  { %285 = vmatpush1.msra.mxu1 %v198_v39  ;;  %v223_v14 = vld [vmem:[#allocation7 + $0x118] sm:$0xff]  ;;  %v222_v15 = vld [vmem:[#allocation7 + $0x110] sm:$0xff]  ;;  %v221_v16 = vld [vmem:[#allocation7 + $0x108] sm:$0xff] }
  0x4f   :  { %286 = vmatprep.subr.mxu1 %v197_v40  ;;  %v220_v17 = vld [vmem:[#allocation7 + $0x100] sm:$0xff]  ;;  %v370_v18 = vld [vmem:[#allocation8 + $0xf8] sm:$0xff]  ;;  %v369_v20 = vld [vmem:[#allocation8 + $0xf0] sm:$0xff]  ;;  %v99_v40 = vlaneseq }
  0x50   :  { %287 = vmatpush1.msra.mxu1 %v196_v41  ;;  %v354_v19 = vld [vmem:[#allocation8 + $0x78] sm:$0xff]  ;;  %468 = vmatprep.subr.mxu0 %v370_v18  ;;  %v353_v21 = vld [vmem:[#allocation8 + $0x70] sm:$0xff]  ;;  %v368_v22 = vld [vmem:[#allocation8 + $0xe8] sm:$0xff] }
  0x51   :  { %288 = vmatprep.subr.mxu1 %v195_v42  ;;  %469 = vmatpush3.msra.mxu0 %v354_v19  ;;  %v352_v23 = vld [vmem:[#allocation8 + $0x68] sm:$0xff]  ;;  %v367_v24 = vld [vmem:[#allocation8 + $0xe0] sm:$0xff]  ;;  %v366_v26 = vld [vmem:[#allocation8 + $0xd8] sm:$0xff]  ;;  %v100_v41 = vshrl.u32 %v99_v40, 7 }
  0x52   :  { %289 = vmatpush1.msra.mxu1 %v194_v43  ;;  %470 = vmatprep.subr.mxu0 %v369_v20  ;;  %v351_v25 = vld [vmem:[#allocation8 + $0x60] sm:$0xff]  ;;  %v350_v27 = vld [vmem:[#allocation8 + $0x58] sm:$0xff]  ;;  %v365_v28 = vld [vmem:[#allocation8 + $0xd0] sm:$0xff] }
  0x53   :  { %290 = vmatprep.subr.mxu1 %v193_v44  ;;  %471 = vmatpush3.msra.mxu0 %v353_v21  ;;  %v349_v29 = vld [vmem:[#allocation8 + $0x50] sm:$0xff]  ;;  %v364_v30 = vld [vmem:[#allocation8 + $0xc8] sm:$0xff]  ;;  %v363_v32 = vld [vmem:[#allocation8 + $0xc0] sm:$0xff]  ;;  %v101_v42 = vsub.s32 0, %v100_v41  ;;  %v105_v44 = vsub.s32 1, %v100_v41 }
  0x54   :  { %291 = vmatpush1.msra.mxu1 %v192_v45  ;;  %472 = vmatprep.subr.mxu0 %v368_v22  ;;  %v348_v31 = vld [vmem:[#allocation8 + $0x48] sm:$0xff]  ;;  %v347_v33 = vld [vmem:[#allocation8 + $0x40] sm:$0xff]  ;;  %v362_v34 = vld [vmem:[#allocation8 + $0xb8] sm:$0xff] }
  0x55   :  { %292 = vmatprep.subr.mxu1 %v191_v46  ;;  %473 = vmatpush3.msra.mxu0 %v352_v23  ;;  %v346_v35 = vld [vmem:[#allocation8 + $0x38] sm:$0xff]  ;;  %v361_v36 = vld [vmem:[#allocation8 + $0xb0] sm:$0xff]  ;;  %v360_v38 = vld [vmem:[#allocation8 + $0xa8] sm:$0xff] }
  0x56   :  { %293 = vmatpush1.msra.mxu1 %v190_v47  ;;  %474 = vmatprep.subr.mxu0 %v367_v24  ;;  %v345_v37 = vld [vmem:[#allocation8 + $0x30] sm:$0xff]  ;;  %v344_v39 = vld [vmem:[#allocation8 + $0x28] sm:$0xff]  ;;  %v97_v43 = vld [vmem:[%s697_s2] sm:$0x3] }
  0x57   :  { %294 = vmatprep.subr.mxu1 %v189_v48  ;;  %475 = vmatpush3.msra.mxu0 %v351_v25  ;;  %v102_v45 = vrot.slane %v97_v43, %v101_v42  ;;  %v106_v46 = vrot.slane %v97_v43, %v105_v44 }
  0x58   :  { %295 = vmatpush1.msra.mxu1 %v188_v49  ;;  %476 = vmatprep.subr.mxu0 %v366_v26 }
  0x59   :  { %296 = vmatprep.subr.mxu1 %v251_v50  ;;  %477 = vmatpush3.msra.mxu0 %v350_v27 }
  0x5a   :  { %297 = vmatpush2.msra.mxu1 %v250_v51  ;;  %478 = vmatprep.subr.mxu0 %v365_v28 }
  0x5b   :  { %298 = vmatprep.subr.mxu1 %v249_v52  ;;  %479 = vmatpush3.msra.mxu0 %v349_v29 }
  0x5c   :  { %299 = vmatpush2.msra.mxu1 %v248_v53  ;;  %480 = vmatprep.subr.mxu0 %v364_v30 }
  0x5d   :  { %300 = vmatprep.subr.mxu1 %v247_v54  ;;  %481 = vmatpush3.msra.mxu0 %v348_v31 }
  0x5e   :  { %301 = vmatpush2.msra.mxu1 %v246_v55  ;;  %482 = vmatprep.subr.mxu0 %v363_v32  ;;  %v359_v55 = vld [vmem:[#allocation8 + $0xa0] sm:$0xff] }
  0x5f   :  { %302 = vmatprep.subr.mxu1 %v245_v56  ;;  %483 = vmatpush3.msra.mxu0 %v347_v33  ;;  %v343_v56 = vld [vmem:[#allocation8 + $0x20] sm:$0xff] }
  0x60   :  { %303 = vmatpush2.msra.mxu1 %v244_v57  ;;  %484 = vmatprep.subr.mxu0 %v362_v34  ;;  %v358_v57 = vld [vmem:[#allocation8 + $0x98] sm:$0xff] }
  0x61   :  { %304 = vmatprep.subr.mxu1 %v243_v58  ;;  %485 = vmatpush3.msra.mxu0 %v346_v35  ;;  %v342_v58 = vld [vmem:[#allocation8 + $0x18] sm:$0xff] }
  0x62   :  { %305 = vmatpush2.msra.mxu1 %v242_v59  ;;  %486 = vmatprep.subr.mxu0 %v361_v36  ;;  %v357_v59 = vld [vmem:[#allocation8 + $0x90] sm:$0xff] }
  0x63   :  { %306 = vmatprep.subr.mxu1 %v241_v60  ;;  %487 = vmatpush3.msra.mxu0 %v345_v37  ;;  %v341_v60 = vld [vmem:[#allocation8 + $0x10] sm:$0xff] }
  0x64   :  { %307 = vmatpush2.msra.mxu1 %v240_v61  ;;  %488 = vmatprep.subr.mxu0 %v360_v38  ;;  %v356_v61 = vld [vmem:[#allocation8 + $0x88] sm:$0xff] }
  0x65   :  { %308 = vmatprep.subr.mxu1 %v239_v62  ;;  %489 = vmatpush3.msra.mxu0 %v344_v39  ;;  %v340_v62 = vld [vmem:[#allocation8 + $0x8] sm:$0xff] }
  0x66   :  { %309 = vmatpush2.msra.mxu1 %v238_v63  ;;  %490 = vmatprep.subr.mxu0 %v359_v55  ;;  %v355_v63 = vld [vmem:[#allocation8 + $0x80] sm:$0xff] }
  0x67   :  { %310 = vmatprep.subr.mxu1 %v237_v0  ;;  %491 = vmatpush3.msra.mxu0 %v343_v56  ;;  %v339_v0 = vld [vmem:[#allocation8] sm:$0xff] }
  0x68   :  { %311 = vmatpush2.msra.mxu1 %v236_v1  ;;  %492 = vmatprep.subr.mxu0 %v358_v57  ;;  %v252_v1 = vld [vmem:[%s699_s4] sm:$0x3]  ;;  %s455_s4 = sshll.u32 %s630_s26, 4  ;;  %s456_s4 = int_to_ptr.vmem [resolvable:$true] %s455_s4 }
  0x69   :  { %312 = vmatprep.subr.mxu1 %v235_v2  ;;  %493 = vmatpush3.msra.mxu0 %v342_v58  ;;  %v257_v2 = vrot.slane %v252_v1, %v101_v42  ;;  %s593_s27 = scalar_lea.vmem %s456_s4, 32  ;;  %p598_p7 = scmp.lt.s32.totalorder %s456_s4, %s456_s4 }
  0x6a   :  { %313 = vmatpush2.msra.mxu1 %v234_v3  ;;  %494 = vmatprep.subr.mxu0 %v357_v59  ;;  %v261_v3 = vrot.slane %v252_v1, %v105_v44  ;;  %p594_p6 = scmp.ne.s32.totalorder %s456_s4, %s593_s27  ;;  %p599_p8 = scmp.lt.s32.totalorder %s593_s27, %s593_s27 }
  0x6b   :  { %314 = vmatprep.subr.mxu1 %v233_v4  ;;  %495 = vmatpush3.msra.mxu0 %v341_v60 }
  0x6c   :  { %315 = vmatpush2.msra.mxu1 %v232_v5  ;;  %496 = vmatprep.subr.mxu0 %v356_v61  ;;  %p600_p9 = por %p599_p8, %p598_p7 }
  0x6d   :  { %316 = vmatprep.subr.mxu1 %v231_v6  ;;  %497 = vmatpush3.msra.mxu0 %v340_v62 }
  0x6e   :  { %317 = vmatpush2.msra.mxu1 %v230_v7  ;;  %498 = vmatprep.subr.mxu0 %v355_v63  ;;  %p601_p10 = pnand %p600_p9, %p594_p6 }
  0x6f   :  { %318 = vmatprep.subr.mxu1 %v229_v8  ;;  %499 = vmatpush3.msra.mxu0 %v339_v0 }
  0x70   :  { %319 = vmatpush2.msra.mxu1 %v228_v9 }
  0x71   :  { %320 = vmatprep.subr.mxu1 %v227_v10 }
  0x72   :  { %321 = vmatpush2.msra.mxu1 %v226_v11 }
  0x73   :  { %322 = vmatprep.subr.mxu1 %v225_v12 }
  0x74   :  { %323 = vmatpush2.msra.mxu1 %v224_v13  ;;  %v467_v13 = vld [vmem:[%s701_s6] ss:$0 sm:$0xff] }
  0x75   :  { %324 = vmatprep.subr.mxu1 %v223_v14 }
  0x76   :  { %325 = vmatpush2.msra.mxu1 %v222_v15 }
  0x77   :  { %326 = vmatprep.subr.mxu1 %v221_v16 }
  0x78   :  { %327 = vmatpush2.msra.mxu1 %v220_v17 }
 0x105   :  { %v179_v47 = vpop.f32.mrf.mxu0 }
 0x106   :  { %v180_v48 = vadd.f32 %v179_v47, %v102_v45 }
 0x107   :  { %v181_v49 = vpop.f32.mrf.mxu0 }
 0x108   :  { %v182_v50 = vadd.f32 %v181_v49, %v106_v46  ;;  %v184_v51 = vmul.f32 0.01, %v180_v48 }
 0x10a   :  { %v185_v52 = vmul.f32 0.01, %v182_v50  ;;  %v186_v54 = vmax.f32 %v180_v48, %v184_v51 }
 0x10c   :  { %v187_v53 = vmax.f32 %v182_v50, %v185_v52 }
 0x10e   :  { %328 = vmatprep.mubr.f32.mxu1 %v187_v53 }
 0x10f   :  { %329 = vmatmul.mubr.f32.vlgmr.msra.gmra.mxu1 %v186_v54 }
 0x1cf   :  { %v330_v4 = vpop.f32.mrf.mxu1 }
 0x1d0   :  { %v331_v5 = vadd.f32 %v330_v4, %v257_v2 }
 0x1d1   :  { %v332_v6 = vpop.f32.mrf.mxu1 }
 0x1d2   :  { %v333_v7 = vadd.f32 %v332_v6, %v261_v3  ;;  %v335_v8 = vmul.f32 0.01, %v331_v5 }
 0x1d4   :  { %v336_v9 = vmul.f32 0.01, %v333_v7  ;;  %v337_v11 = vmax.f32 %v331_v5, %v335_v8 }
 0x1d6   :  { %v338_v10 = vmax.f32 %v333_v7, %v336_v9 }
 0x1d8   :  { %442 = vmatprep.mubr.f32.mxu0 %v338_v10 }
 0x1d9   :  { %443 = vmatmul.mubr.f32.vlgmr.msra.gmra.mxu0 %v337_v11 }
 0x299   :  { %v500_v12 = vpop.f32.mrf.mxu0 }
 0x29b   :  { %v501_v14 = vpop.f32.mrf.mxu0 }
 0x29c   :  { %v502_v15 = vadd.f32 %v501_v14, %v500_v12 }
 0x29e   :  { %v445_v16 = vadd.f32 %v502_v15, %v467_v13 }
 0x2a0   :  { %448 = vst [vmem:[#allocation10] sm:$0x3] %v445_v16 }
 0x2a1   :  { %604 = shalt.err (!%p601_p10)
}
 0x2a2   :  { %458 = dma.vmem_to_hbm [thread:$0]  %s456_s4, 32, %s702_s7, [#allocation4]  }
 0x2a3   :  { %619 = dma.done.wait [#allocation4], 32  }
 0x2a4   :  { %620 = vsyncadd [#allocation4], 4294967264 }
 0x2a5   :  { %462 = vsyncpa [#allocation3], 1 }
 0x2a6   :  { %463 = vsyncpa [#allocation6], 1 }
 0x2a7   :  { %464 = vsyncpa [#allocation9], 1 }
 0x2a8   :  { %465 = vsyncpa [#allocation4], 1 }

// kernel: tpu_custom_call.1
= control target key start
LH: loop header
LB: loop body
LE: loop exit
PB: predicated region body
PF: predicated region fallthrough
CT: control target
= control target key end

     0   :  { %12 = vsyncpa [#allocation3], 0  ;;  %s695_s0 = inlined_call_operand.hbm [shape: f32[2,64], index: 0, kind: input, shape index: {}]   ;;  %s696_s1 = inlined_call_operand.hbm [shape: f32[64,256], index: 1, kind: input, shape index: {}]   ;;  %s697_s2 = inlined_call_operand.vmem [shape: f32[1,256], index: 2, kind: input, shape index: {}]   ;;  %s698_s3 = inlined_call_operand.hbm [shape: f32[256,256], index: 3, kind: input, shape index: {}]   ;;  %s699_s4 = inlined_call_operand.vmem [shape: f32[1,256], index: 4, kind: input, shape index: {}]   ;;  %s700_s5 = inlined_call_operand.hbm [shape: f32[256,128], index: 5, kind: input, shape index: {}]   ;;  %s701_s6 = inlined_call_operand.vmem [shape: f32[1,128], index: 6, kind: input, shape index: {}]   ;;  %s702_s7 = inlined_call_operand.hbm [shape: f32[2,128], index: 7, kind: output, shape index: {}]  }
   0x1   :  { %13 = vsyncpa [#allocation6], 0 }
   0x2   :  { %14 = vsyncpa [#allocation9], 0 }
   0x3   :  { %15 = vsyncpa [#allocation4], 0  ;;  %s621_s24 = smov [#allocation5]  }
   0x4   :  { %s31_s25 = sshll.u32 %s621_s24, 4  ;;  %s32_s25 = int_to_ptr.vmem [resolvable:$true] %s31_s25 }
   0x5   :  { %s521_s26 = scalar_lea.vmem %s32_s25, 2048  ;;  %p526_p1 = scmp.lt.s32.totalorder %s32_s25, %s32_s25 }
   0x6   :  { %p522_p0 = scmp.ne.s32.totalorder %s32_s25, %s521_s26  ;;  %p527_p2 = scmp.lt.s32.totalorder %s521_s26, %s521_s26 }
   0x8   :  { %p528_p3 = por %p527_p2, %p526_p1 }
   0xa   :  { %p529_p4 = pnand %p528_p3, %p522_p0 }
   0xc   :  { %532 = shalt.err (!%p529_p4)
}
   0xd   :  { %s622_s27 = smov 256   ;;  %s623_s28 = smov 16  }
   0xe   :  { %37 = dma.hbm_to_vmem [thread:$0]  %s696_s1, 2048, %s32_s25, [#allocation6], %s622_s27, %s622_s27, %s623_s28  }
   0xf   :  { %s624_s8 = smov [#allocation2]   ;;  %s625_s10 = smov [#allocation7]  }
  0x10   :  { %s22_s9 = sshll.u32 %s624_s8, 4  ;;  %s45_s11 = sshll.u32 %s625_s10, 4  ;;  %s23_s9 = int_to_ptr.vmem [resolvable:$true] %s22_s9  ;;  %s46_s11 = int_to_ptr.vmem [resolvable:$true] %s45_s11 }
  0x11   :  { %s541_s12 = scalar_lea.vmem %s23_s9, 32  ;;  %p546_p6 = scmp.lt.s32.totalorder %s23_s9, %s23_s9 }
  0x12   :  { %p542_p5 = scmp.ne.s32.totalorder %s23_s9, %s541_s12  ;;  %p547_p7 = scmp.lt.s32.totalorder %s541_s12, %s541_s12 }
  0x14   :  { %p548_p8 = por %p547_p7, %p546_p6 }
  0x16   :  { %p549_p9 = pnand %p548_p8, %p542_p5 }
  0x18   :  { %552 = shalt.err (!%p549_p9)
}
  0x19   :  { %25 = dma.hbm_to_vmem [thread:$0]  %s695_s0, 32, %s23_s9, [#allocation3]  }
  0x1a   :  { %s561_s15 = scalar_lea.vmem %s46_s11, 8192  ;;  %p566_p11 = scmp.lt.s32.totalorder %s46_s11, %s46_s11 }
  0x1b   :  { %p562_p10 = scmp.ne.s32.totalorder %s46_s11, %s561_s15  ;;  %p567_p12 = scmp.lt.s32.totalorder %s561_s15, %s561_s15 }
  0x1d   :  { %p568_p13 = por %p567_p12, %p566_p11 }
  0x1f   :  { %p569_p0 = pnand %p568_p13, %p562_p10 }
  0x21   :  { %572 = shalt.err (!%p569_p0)
}
  0x22   :  { %51 = dma.hbm_to_vmem [thread:$0]  %s698_s3, 8192, %s46_s11, [#allocation6], %s622_s27, %s622_s27, %s623_s28  }
  0x23   :  { %s626_s17 = smov [#allocation8]  }
  0x24   :  { %s59_s18 = sshll.u32 %s626_s17, 4  ;;  %s60_s18 = int_to_ptr.vmem [resolvable:$true] %s59_s18 }
  0x25   :  { %s581_s19 = scalar_lea.vmem %s60_s18, 4096  ;;  %p586_p2 = scmp.lt.s32.totalorder %s60_s18, %s60_s18 }
  0x26   :  { %p582_p1 = scmp.ne.s32.totalorder %s60_s18, %s581_s19  ;;  %p587_p3 = scmp.lt.s32.totalorder %s581_s19, %s581_s19 }
  0x28   :  { %p588_p4 = por %p587_p3, %p586_p2 }
  0x2a   :  { %p589_p5 = pnand %p588_p4, %p582_p1 }
  0x2c   :  { %592 = shalt.err (!%p589_p5)
}
  0x2d   :  { %s627_s0 = smov 128   ;;  %s628_s20 = smov 8  }
  0x2e   :  { %65 = dma.hbm_to_vmem [thread:$0]  %s700_s5, 4096, %s60_s18, [#allocation9], %s627_s0, %s627_s0, %s628_s20  }
  0x2f   :  { %613 = dma.done.wait [#allocation3], 32  }
  0x30   :  { %614 = vsyncadd [#allocation3], 4294967264 }
  0x31   :  { %615 = dma.done.wait [#allocation6], 10240  }
  0x32   :  { %616 = vsyncadd [#allocation6], 4294957056 }
  0x33   :  { %617 = dma.done.wait [#allocation9], 4096  }
  0x34   :  { %618 = vsyncadd [#allocation9], 4294963200  ;;  %v629_v0 = vmov 0.0   ;;  %v96_v1 = vld [vmem:[#allocation5 + $0x78] sm:$0xff]  ;;  %v95_v2 = vld [vmem:[#allocation5 + $0x70] sm:$0xff]  ;;  %vm109_vm0 = vcmask 523264  }
  0x35   :  { %177 = vmatprep.mubr.f32.mxu0 %v629_v0  ;;  %v94_v3 = vld [vmem:[#allocation5 + $0x68] sm:$0xff]  ;;  %129 = vmatprep.subr.mxu0 %v96_v1  ;;  %v93_v4 = vld [vmem:[#allocation5 + $0x60] sm:$0xff]  ;;  %v92_v5 = vld [vmem:[#allocation5 + $0x58] sm:$0xff]  ;;  %s630_s26 = smov [#allocation10]  }
  0x36   :  { %130 = vmatpush1.msra.mxu0 %v95_v2  ;;  %v91_v6 = vld [vmem:[#allocation5 + $0x50] sm:$0xff]  ;;  %v90_v7 = vld [vmem:[#allocation5 + $0x48] sm:$0xff]  ;;  %v89_v8 = vld [vmem:[#allocation5 + $0x40] sm:$0xff] }
  0x37   :  { %131 = vmatprep.subr.mxu0 %v94_v3  ;;  %v88_v9 = vld [vmem:[#allocation5 + $0x38] sm:$0xff]  ;;  %v218_v11 = vld [vmem:[#allocation7 + $0xf0] sm:$0xff]  ;;  %v217_v12 = vld [vmem:[#allocation7 + $0xe8] sm:$0xff] }
  0x38   :  { %132 = vmatpush1.msra.mxu0 %v93_v4  ;;  %v219_v10 = vld [vmem:[#allocation7 + $0xf8] sm:$0xff]  ;;  %v216_v13 = vld [vmem:[#allocation7 + $0xe0] sm:$0xff]  ;;  %v87_v14 = vld [vmem:[#allocation5 + $0x30] sm:$0xff] }
  0x39   :  { %133 = vmatprep.subr.mxu0 %v92_v5  ;;  %264 = vmatprep.subr.mxu1 %v219_v10  ;;  %v215_v15 = vld [vmem:[#allocation7 + $0xd8] sm:$0xff]  ;;  %v86_v16 = vld [vmem:[#allocation5 + $0x28] sm:$0xff]  ;;  %v214_v17 = vld [vmem:[#allocation7 + $0xd0] sm:$0xff] }
  0x3a   :  { %134 = vmatpush1.msra.mxu0 %v91_v6  ;;  %265 = vmatpush1.msra.mxu1 %v218_v11  ;;  %v85_v18 = vld [vmem:[#allocation5 + $0x20] sm:$0xff]  ;;  %v213_v19 = vld [vmem:[#allocation7 + $0xc8] sm:$0xff]  ;;  %v84_v20 = vld [vmem:[#allocation5 + $0x18] sm:$0xff] }
  0x3b   :  { %135 = vmatprep.subr.mxu0 %v90_v7  ;;  %266 = vmatprep.subr.mxu1 %v217_v12  ;;  %v212_v21 = vld [vmem:[#allocation7 + $0xc0] sm:$0xff]  ;;  %v83_v22 = vld [vmem:[#allocation5 + $0x10] sm:$0xff]  ;;  %v211_v23 = vld [vmem:[#allocation7 + $0xb8] sm:$0xff] }
  0x3c   :  { %136 = vmatpush1.msra.mxu0 %v89_v8  ;;  %267 = vmatpush1.msra.mxu1 %v216_v13  ;;  %v82_v24 = vld [vmem:[#allocation5 + $0x8] sm:$0xff]  ;;  %v210_v25 = vld [vmem:[#allocation7 + $0xb0] sm:$0xff]  ;;  %v81_v26 = vld [vmem:[#allocation5] sm:$0xff] }
  0x3d   :  { %137 = vmatprep.subr.mxu0 %v88_v9  ;;  %268 = vmatprep.subr.mxu1 %v215_v15  ;;  %v209_v27 = vld [vmem:[#allocation7 + $0xa8] sm:$0xff]  ;;  %v80_v28 = vld [vmem:[#allocation2] sm:$0x3]  ;;  %v208_v29 = vld [vmem:[#allocation7 + $0xa0] sm:$0xff] }
  0x3e   :  { %138 = vmatpush1.msra.mxu0 %v87_v14  ;;  %269 = vmatpush1.msra.mxu1 %v214_v17  ;;  %v207_v30 = vld [vmem:[#allocation7 + $0x98] sm:$0xff]  ;;  %v206_v31 = vld [vmem:[#allocation7 + $0x90] sm:$0xff]  ;;  %v205_v32 = vld [vmem:[#allocation7 + $0x88] sm:$0xff] }
  0x3f   :  { %139 = vmatprep.subr.mxu0 %v86_v16  ;;  %270 = vmatprep.subr.mxu1 %v213_v19  ;;  %v204_v33 = vld [vmem:[#allocation7 + $0x80] sm:$0xff]  ;;  %v203_v34 = vld [vmem:[#allocation7 + $0x78] sm:$0xff]  ;;  %v202_v35 = vld [vmem:[#allocation7 + $0x70] sm:$0xff] }
  0x40   :  { %140 = vmatpush1.msra.mxu0 %v85_v18  ;;  %271 = vmatpush1.msra.mxu1 %v212_v21  ;;  %v201_v36 = vld [vmem:[#allocation7 + $0x68] sm:$0xff]  ;;  %v200_v37 = vld [vmem:[#allocation7 + $0x60] sm:$0xff]  ;;  %v199_v38 = vld [vmem:[#allocation7 + $0x58] sm:$0xff] }
  0x41   :  { %141 = vmatprep.subr.mxu0 %v84_v20  ;;  %272 = vmatprep.subr.mxu1 %v211_v23  ;;  %v198_v39 = vld [vmem:[#allocation7 + $0x50] sm:$0xff]  ;;  %v197_v40 = vld [vmem:[#allocation7 + $0x48] sm:$0xff]  ;;  %v196_v41 = vld [vmem:[#allocation7 + $0x40] sm:$0xff] }
  0x42   :  { %142 = vmatpush1.msra.mxu0 %v83_v22  ;;  %273 = vmatpush1.msra.mxu1 %v210_v25  ;;  %v195_v42 = vld [vmem:[#allocation7 + $0x38] sm:$0xff]  ;;  %v194_v43 = vld [vmem:[#allocation7 + $0x30] sm:$0xff]  ;;  %v193_v44 = vld [vmem:[#allocation7 + $0x28] sm:$0xff] }
  0x43   :  { %143 = vmatprep.subr.mxu0 %v82_v24  ;;  %274 = vmatprep.subr.mxu1 %v209_v27  ;;  %v192_v45 = vld [vmem:[#allocation7 + $0x20] sm:$0xff]  ;;  %v191_v46 = vld [vmem:[#allocation7 + $0x18] sm:$0xff]  ;;  %v190_v47 = vld [vmem:[#allocation7 + $0x10] sm:$0xff] }
  0x44   :  { %144 = vmatpush1.msra.mxu0 %v81_v26  ;;  %275 = vmatpush1.msra.mxu1 %v208_v29  ;;  %v189_v48 = vld [vmem:[#allocation7 + $0x8] sm:$0xff]  ;;  %v188_v49 = vld [vmem:[#allocation7] sm:$0xff]  ;;  %v251_v50 = vld [vmem:[#allocation7 + $0x1f8] sm:$0xff] }
  0x45   :  { %466 = vmatmul.mubr.msk.f32.vlgmr.msra.gmra.mxu0 %vm109_vm0, %v80_v28  ;;  %276 = vmatprep.subr.mxu1 %v207_v30  ;;  %v250_v51 = vld [vmem:[#allocation7 + $0x1f0] sm:$0xff]  ;;  %v249_v52 = vld [vmem:[#allocation7 + $0x1e8] sm:$0xff]  ;;  %v248_v53 = vld [vmem:[#allocation7 + $0x1e0] sm:$0xff] }
  0x46   :  { %277 = vmatpush1.msra.mxu1 %v206_v31  ;;  %v247_v54 = vld [vmem:[#allocation7 + $0x1d8] sm:$0xff]  ;;  %v246_v55 = vld [vmem:[#allocation7 + $0x1d0] sm:$0xff]  ;;  %v245_v56 = vld [vmem:[#allocation7 + $0x1c8] sm:$0xff] }
  0x47   :  { %278 = vmatprep.subr.mxu1 %v205_v32  ;;  %v244_v57 = vld [vmem:[#allocation7 + $0x1c0] sm:$0xff]  ;;  %v243_v58 = vld [vmem:[#allocation7 + $0x1b8] sm:$0xff]  ;;  %v242_v59 = vld [vmem:[#allocation7 + $0x1b0] sm:$0xff] }
  0x48   :  { %279 = vmatpush1.msra.mxu1 %v204_v33  ;;  %v241_v60 = vld [vmem:[#allocation7 + $0x1a8] sm:$0xff]  ;;  %v240_v61 = vld [vmem:[#allocation7 + $0x1a0] sm:$0xff]  ;;  %v239_v62 = vld [vmem:[#allocation7 + $0x198] sm:$0xff] }
  0x49   :  { %280 = vmatprep.subr.mxu1 %v203_v34  ;;  %v238_v63 = vld [vmem:[#allocation7 + $0x190] sm:$0xff]  ;;  %v237_v0 = vld [vmem:[#allocation7 + $0x188] sm:$0xff]  ;;  %v236_v1 = vld [vmem:[#allocation7 + $0x180] sm:$0xff] }
  0x4a   :  { %281 = vmatpush1.msra.mxu1 %v202_v35  ;;  %v235_v2 = vld [vmem:[#allocation7 + $0x178] sm:$0xff]  ;;  %v234_v3 = vld [vmem:[#allocation7 + $0x170] sm:$0xff]  ;;  %v233_v4 = vld [vmem:[#allocation7 + $0x168] sm:$0xff] }
  0x4b   :  { %282 = vmatprep.subr.mxu1 %v201_v36  ;;  %v232_v5 = vld [vmem:[#allocation7 + $0x160] sm:$0xff]  ;;  %v231_v6 = vld [vmem:[#allocation7 + $0x158] sm:$0xff]  ;;  %v230_v7 = vld [vmem:[#allocation7 + $0x150] sm:$0xff] }
  0x4c   :  { %283 = vmatpush1.msra.mxu1 %v200_v37  ;;  %v229_v8 = vld [vmem:[#allocation7 + $0x148] sm:$0xff]  ;;  %v228_v9 = vld [vmem:[#allocation7 + $0x140] sm:$0xff]  ;;  %v227_v10 = vld [vmem:[#allocation7 + $0x138] sm:$0xff] }
  0x4d   :  { %284 = vmatprep.subr.mxu1 %v199_v38  ;;  %v226_v11 = vld [vmem:[#allocation7 + $0x130] sm:$0xff]  ;;  %v225_v12 = vld [vmem:[#allocation7 + $0x128] sm:$0xff]  ;;  %v224_v13 = vld [vmem:[#allocation7 + $0x120] sm:$0xff] }
  0x4e   :  { %285 = vmatpush1.msra.mxu1 %v198_v39  ;;  %v223_v14 = vld [vmem:[#allocation7 + $0x118] sm:$0xff]  ;;  %v222_v15 = vld [vmem:[#allocation7 + $0x110] sm:$0xff]  ;;  %v221_v16 = vld [vmem:[#allocation7 + $0x108] sm:$0xff] }
  0x4f   :  { %286 = vmatprep.subr.mxu1 %v197_v40  ;;  %v220_v17 = vld [vmem:[#allocation7 + $0x100] sm:$0xff]  ;;  %v370_v18 = vld [vmem:[#allocation8 + $0xf8] sm:$0xff]  ;;  %v369_v20 = vld [vmem:[#allocation8 + $0xf0] sm:$0xff]  ;;  %v99_v40 = vlaneseq }
  0x50   :  { %287 = vmatpush1.msra.mxu1 %v196_v41  ;;  %v354_v19 = vld [vmem:[#allocation8 + $0x78] sm:$0xff]  ;;  %468 = vmatprep.subr.mxu0 %v370_v18  ;;  %v353_v21 = vld [vmem:[#allocation8 + $0x70] sm:$0xff]  ;;  %v368_v22 = vld [vmem:[#allocation8 + $0xe8] sm:$0xff] }
  0x51   :  { %288 = vmatprep.subr.mxu1 %v195_v42  ;;  %469 = vmatpush3.msra.mxu0 %v354_v19  ;;  %v352_v23 = vld [vmem:[#allocation8 + $0x68] sm:$0xff]  ;;  %v367_v24 = vld [vmem:[#allocation8 + $0xe0] sm:$0xff]  ;;  %v366_v26 = vld [vmem:[#allocation8 + $0xd8] sm:$0xff]  ;;  %v100_v41 = vshrl.u32 %v99_v40, 7 }
  0x52   :  { %289 = vmatpush1.msra.mxu1 %v194_v43  ;;  %470 = vmatprep.subr.mxu0 %v369_v20  ;;  %v351_v25 = vld [vmem:[#allocation8 + $0x60] sm:$0xff]  ;;  %v350_v27 = vld [vmem:[#allocation8 + $0x58] sm:$0xff]  ;;  %v365_v28 = vld [vmem:[#allocation8 + $0xd0] sm:$0xff] }
  0x53   :  { %290 = vmatprep.subr.mxu1 %v193_v44  ;;  %471 = vmatpush3.msra.mxu0 %v353_v21  ;;  %v349_v29 = vld [vmem:[#allocation8 + $0x50] sm:$0xff]  ;;  %v364_v30 = vld [vmem:[#allocation8 + $0xc8] sm:$0xff]  ;;  %v363_v32 = vld [vmem:[#allocation8 + $0xc0] sm:$0xff]  ;;  %v101_v42 = vsub.s32 0, %v100_v41  ;;  %v105_v44 = vsub.s32 1, %v100_v41 }
  0x54   :  { %291 = vmatpush1.msra.mxu1 %v192_v45  ;;  %472 = vmatprep.subr.mxu0 %v368_v22  ;;  %v348_v31 = vld [vmem:[#allocation8 + $0x48] sm:$0xff]  ;;  %v347_v33 = vld [vmem:[#allocation8 + $0x40] sm:$0xff]  ;;  %v362_v34 = vld [vmem:[#allocation8 + $0xb8] sm:$0xff] }
  0x55   :  { %292 = vmatprep.subr.mxu1 %v191_v46  ;;  %473 = vmatpush3.msra.mxu0 %v352_v23  ;;  %v346_v35 = vld [vmem:[#allocation8 + $0x38] sm:$0xff]  ;;  %v361_v36 = vld [vmem:[#allocation8 + $0xb0] sm:$0xff]  ;;  %v360_v38 = vld [vmem:[#allocation8 + $0xa8] sm:$0xff] }
  0x56   :  { %293 = vmatpush1.msra.mxu1 %v190_v47  ;;  %474 = vmatprep.subr.mxu0 %v367_v24  ;;  %v345_v37 = vld [vmem:[#allocation8 + $0x30] sm:$0xff]  ;;  %v344_v39 = vld [vmem:[#allocation8 + $0x28] sm:$0xff]  ;;  %v97_v43 = vld [vmem:[%s697_s2] sm:$0x3] }
  0x57   :  { %294 = vmatprep.subr.mxu1 %v189_v48  ;;  %475 = vmatpush3.msra.mxu0 %v351_v25  ;;  %v102_v45 = vrot.slane %v97_v43, %v101_v42  ;;  %v106_v46 = vrot.slane %v97_v43, %v105_v44 }
  0x58   :  { %295 = vmatpush1.msra.mxu1 %v188_v49  ;;  %476 = vmatprep.subr.mxu0 %v366_v26 }
  0x59   :  { %296 = vmatprep.subr.mxu1 %v251_v50  ;;  %477 = vmatpush3.msra.mxu0 %v350_v27 }
  0x5a   :  { %297 = vmatpush2.msra.mxu1 %v250_v51  ;;  %478 = vmatprep.subr.mxu0 %v365_v28 }
  0x5b   :  { %298 = vmatprep.subr.mxu1 %v249_v52  ;;  %479 = vmatpush3.msra.mxu0 %v349_v29 }
  0x5c   :  { %299 = vmatpush2.msra.mxu1 %v248_v53  ;;  %480 = vmatprep.subr.mxu0 %v364_v30 }
  0x5d   :  { %300 = vmatprep.subr.mxu1 %v247_v54  ;;  %481 = vmatpush3.msra.mxu0 %v348_v31 }
  0x5e   :  { %301 = vmatpush2.msra.mxu1 %v246_v55  ;;  %482 = vmatprep.subr.mxu0 %v363_v32  ;;  %v359_v55 = vld [vmem:[#allocation8 + $0xa0] sm:$0xff] }
  0x5f   :  { %302 = vmatprep.subr.mxu1 %v245_v56  ;;  %483 = vmatpush3.msra.mxu0 %v347_v33  ;;  %v343_v56 = vld [vmem:[#allocation8 + $0x20] sm:$0xff] }
  0x60   :  { %303 = vmatpush2.msra.mxu1 %v244_v57  ;;  %484 = vmatprep.subr.mxu0 %v362_v34  ;;  %v358_v57 = vld [vmem:[#allocation8 + $0x98] sm:$0xff] }
  0x61   :  { %304 = vmatprep.subr.mxu1 %v243_v58  ;;  %485 = vmatpush3.msra.mxu0 %v346_v35  ;;  %v342_v58 = vld [vmem:[#allocation8 + $0x18] sm:$0xff] }
  0x62   :  { %305 = vmatpush2.msra.mxu1 %v242_v59  ;;  %486 = vmatprep.subr.mxu0 %v361_v36  ;;  %v357_v59 = vld [vmem:[#allocation8 + $0x90] sm:$0xff] }
  0x63   :  { %306 = vmatprep.subr.mxu1 %v241_v60  ;;  %487 = vmatpush3.msra.mxu0 %v345_v37  ;;  %v341_v60 = vld [vmem:[#allocation8 + $0x10] sm:$0xff] }
  0x64   :  { %307 = vmatpush2.msra.mxu1 %v240_v61  ;;  %488 = vmatprep.subr.mxu0 %v360_v38  ;;  %v356_v61 = vld [vmem:[#allocation8 + $0x88] sm:$0xff] }
  0x65   :  { %308 = vmatprep.subr.mxu1 %v239_v62  ;;  %489 = vmatpush3.msra.mxu0 %v344_v39  ;;  %v340_v62 = vld [vmem:[#allocation8 + $0x8] sm:$0xff] }
  0x66   :  { %309 = vmatpush2.msra.mxu1 %v238_v63  ;;  %490 = vmatprep.subr.mxu0 %v359_v55  ;;  %v355_v63 = vld [vmem:[#allocation8 + $0x80] sm:$0xff] }
  0x67   :  { %310 = vmatprep.subr.mxu1 %v237_v0  ;;  %491 = vmatpush3.msra.mxu0 %v343_v56  ;;  %v339_v0 = vld [vmem:[#allocation8] sm:$0xff] }
  0x68   :  { %311 = vmatpush2.msra.mxu1 %v236_v1  ;;  %492 = vmatprep.subr.mxu0 %v358_v57  ;;  %v252_v1 = vld [vmem:[%s699_s4] sm:$0x3]  ;;  %s455_s4 = sshll.u32 %s630_s26, 4  ;;  %s456_s4 = int_to_ptr.vmem [resolvable:$true] %s455_s4 }
  0x69   :  { %312 = vmatprep.subr.mxu1 %v235_v2  ;;  %493 = vmatpush3.msra.mxu0 %v342_v58  ;;  %v257_v2 = vrot.slane %v252_v1, %v101_v42  ;;  %s593_s27 = scalar_lea.vmem %s456_s4, 32  ;;  %p598_p7 = scmp.lt.s32.totalorder %s456_s4, %s456_s4 }
  0x6a   :  { %313 = vmatpush2.msra.mxu1 %v234_v3  ;;  %494 = vmatprep.subr.mxu0 %v357_v59  ;;  %v261_v3 = vrot.slane %v252_v1, %v105_v44  ;;  %p594_p6 = scmp.ne.s32.totalorder %s456_s4, %s593_s27  ;;  %p599_p8 = scmp.lt.s32.totalorder %s593_s27, %s593_s27 }
  0x6b   :  { %314 = vmatprep.subr.mxu1 %v233_v4  ;;  %495 = vmatpush3.msra.mxu0 %v341_v60 }
  0x6c   :  { %315 = vmatpush2.msra.mxu1 %v232_v5  ;;  %496 = vmatprep.subr.mxu0 %v356_v61  ;;  %p600_p9 = por %p599_p8, %p598_p7 }
  0x6d   :  { %316 = vmatprep.subr.mxu1 %v231_v6  ;;  %497 = vmatpush3.msra.mxu0 %v340_v62 }
  0x6e   :  { %317 = vmatpush2.msra.mxu1 %v230_v7  ;;  %498 = vmatprep.subr.mxu0 %v355_v63  ;;  %p601_p10 = pnand %p600_p9, %p594_p6 }
  0x6f   :  { %318 = vmatprep.subr.mxu1 %v229_v8  ;;  %499 = vmatpush3.msra.mxu0 %v339_v0 }
  0x70   :  { %319 = vmatpush2.msra.mxu1 %v228_v9 }
  0x71   :  { %320 = vmatprep.subr.mxu1 %v227_v10 }
  0x72   :  { %321 = vmatpush2.msra.mxu1 %v226_v11 }
  0x73   :  { %322 = vmatprep.subr.mxu1 %v225_v12 }
  0x74   :  { %323 = vmatpush2.msra.mxu1 %v224_v13  ;;  %v467_v13 = vld [vmem:[%s701_s6] ss:$0 sm:$0xff] }
  0x75   :  { %324 = vmatprep.subr.mxu1 %v223_v14 }
  0x76   :  { %325 = vmatpush2.msra.mxu1 %v222_v15 }
  0x77   :  { %326 = vmatprep.subr.mxu1 %v221_v16 }
  0x78   :  { %327 = vmatpush2.msra.mxu1 %v220_v17 }
 0x105   :  { %v179_v47 = vpop.f32.mrf.mxu0 }
 0x106   :  { %v180_v48 = vadd.f32 %v179_v47, %v102_v45 }
 0x107   :  { %v181_v49 = vpop.f32.mrf.mxu0 }
 0x108   :  { %v182_v50 = vadd.f32 %v181_v49, %v106_v46  ;;  %v184_v51 = vmul.f32 0.01, %v180_v48 }
 0x10a   :  { %v185_v52 = vmul.f32 0.01, %v182_v50  ;;  %v186_v54 = vmax.f32 %v180_v48, %v184_v51 }
 0x10c   :  { %v187_v53 = vmax.f32 %v182_v50, %v185_v52 }
 0x10e   :  { %328 = vmatprep.mubr.f32.mxu1 %v187_v53 }
 0x10f   :  { %329 = vmatmul.mubr.f32.vlgmr.msra.gmra.mxu1 %v186_v54 }
 0x1cf   :  { %v330_v4 = vpop.f32.mrf.mxu1 }
 0x1d0   :  { %v331_v5 = vadd.f32 %v330_v4, %v257_v2 }
 0x1d1   :  { %v332_v6 = vpop.f32.mrf.mxu1 }
 0x1d2   :  { %v333_v7 = vadd.f32 %v332_v6, %v261_v3  ;;  %v335_v8 = vmul.f32 0.01, %v331_v5 }
 0x1d4   :  { %v336_v9 = vmul.f32 0.01, %v333_v7  ;;  %v337_v11 = vmax.f32 %v331_v5, %v335_v8 }
 0x1d6   :  { %v338_v10 = vmax.f32 %v333_v7, %v336_v9 }
 0x1d8   :  { %442 = vmatprep.mubr.f32.mxu0 %v338_v10 }
 0x1d9   :  { %443 = vmatmul.mubr.f32.vlgmr.msra.gmra.mxu0 %v337_v11 }
 0x299   :  { %v500_v12 = vpop.f32.mrf.mxu0 }
 0x29b   :  { %v501_v14 = vpop.f32.mrf.mxu0 }
 0x29c   :  { %v502_v15 = vadd.f32 %v501_v14, %v500_v12 }
 0x29e   :  { %v445_v16 = vadd.f32 %v502_v15, %v467_v13 }
 0x2a0   :  { %448 = vst [vmem:[#allocation10] sm:$0x3] %v445_v16 }
 0x2a1   :  { %604 = shalt.err (!%p601_p10)
}
 0x2a2   :  { %458 = dma.vmem_to_hbm [thread:$0]  %s456_s4, 32, %s702_s7, [#allocation4]  }
 0x2a3   :  { %619 = dma.done.wait [#allocation4], 32  }
 0x2a4   :  { %620 = vsyncadd [#allocation4], 4294967264 }
 0x2a5   :  { %462 = vsyncpa [#allocation3], 1 }
 0x2a6   :  { %463 = vsyncpa [#allocation6], 1 }
 0x2a7   :  { %464 = vsyncpa [#allocation9], 1 }
 0x2a8   :  { %465 = vsyncpa [#allocation4], 1 }

</bundles_post_ra>
